<compile_context>
chip_gen: v7x
topology: tpu7x:2x2x1
jax: 0.10.0
libtpu: 0.0.40
codegen_flags: <defaults>
</compile_context>

<pallas_src>
import functools

import jax
import jax.numpy as jnp
from jax.experimental import pallas as pl
from jax.experimental.pallas import tpu as pltpu


def _round_up(n, m):
    return ((n + m - 1) // m) * m


def _constrained_xor_kernel(xmuT_ref, w1p_ref, b1_ref, w2a_ref, b2_ref,
                            uT_ref, zmu_ref, *, hidden):
    """One batch tile, batch on the lane axis (everything lane-dense).

    xmuT_ref: [D_in + C, TB]       packed [x.T ; mu.T]
    w1p_ref:  [H, D_in + C]        [W1 | 0]   (zero cols kill the mu rows)
    b1_ref:   [H, 1]
    w2a_ref:  [O, H + D_in + C]    [W2.T | 0 | A.T]
    b2_ref:   [O, 1]
    uT_ref:   [O, TB]
    zmu_ref:  [H + D_in + C, TB]   VMEM scratch holding [z ; x.T ; mu.T]
    """
    # Layer 1: h = W1 @ x.T  (zero-padded mu columns contribute nothing).
    h = jnp.dot(w1p_ref[...], xmuT_ref[...], preferred_element_type=jnp.float32)
    zmu_ref[:hidden, :] = jax.nn.sigmoid(h + b1_ref[...])       # EUP sigmoid
    zmu_ref[hidden:, :] = xmuT_ref[...].astype(zmu_ref.dtype)   # aligned 8-row copy
    # Layer 2 + constraint term in a single MXU pass:
    #   u.T = [W2.T | 0 | A.T] @ [z ; x.T ; mu.T] + b2
    u = jnp.dot(w2a_ref[...], zmu_ref[...], preferred_element_type=jnp.float32)
    uT_ref[...] = (u + b2_ref[...]).astype(uT_ref.dtype)


@functools.partial(jax.jit, static_argnames=("block_b",))
def constrained_xor_forward(x, mu, w1, b1, w2, b2, A, *, block_b=None):
    """u = sigmoid(x @ w1.T + b1) @ w2 + b2 + mu @ A   (Constrained_XOR.forward).

    x:  [B, D_in]   mu: [B, C]
    w1: [H, D_in]   b1: [H]        (XOR_LowerLayers fc1, PyTorch layout)
    w2: [H, O]      b2: [O]        (Lagrange W / bias)
    A:  [C, O]                     (constraint matrix buffer)
    returns u: [B, O]
    """
    B, D_in = x.shape
    H = w1.shape[0]
    C, O = A.shape
    assert w1.shape == (H, D_in)
    assert w2.shape == (H, O)
    assert mu.shape == (B, C)
    assert b1.shape == (H,) and b2.shape == (O,)
    assert H % 8 == 0, "hidden_size must be a multiple of 8 for aligned scratch"

    # ---- Batch tile (lane axis) ----
    # 256-aligned (full v6e/v7x MXU pass, multiple of 128 for v5e); a single
    # block for small/medium batches (per-grid-step overhead >> per-step
    # compute at 128-wide tiles); capped at 4096 so very large batches still
    # pipeline and v7x can shard >=2 parallel blocks across its 2 TensorCores.
    if block_b is None:
        TB = min(_round_up(B, 256), 4096)
    else:
        TB = _round_up(block_b, 256)
    num_blocks = pl.cdiv(B, TB)
    Bp = num_blocks * TB

    # ---- Operand packing (all inside this jit, fuses around the call) ----
    xmuT = jnp.concatenate([x.T, mu.T], axis=0)               # [D_in + C, B]
    if Bp != B:
        xmuT = jnp.pad(xmuT, ((0, 0), (0, Bp - B)))

    K1 = D_in + C                                             # layer-1 K dim
    K2 = H + K1                                               # layer-2 K dim
    w1p = jnp.concatenate([w1, jnp.zeros((H, C), w1.dtype)], axis=1)        # [H, K1]
    w2a = jnp.concatenate([w2.T, jnp.zeros((O, D_in), w2.dtype), A.T],
                          axis=1)                                           # [O, K2]
    b1c = b1.reshape(H, 1)
    b2c = b2.reshape(O, 1)

    flops = 2 * Bp * (K1 * H + K2 * O) + Bp * (H + O)
    bytes_accessed = 4 * (Bp * K1 + H * K1 + H + O * K2 + O + Bp * O)
    cost = pl.CostEstimate(flops=flops, transcendentals=Bp * H,
                           bytes_accessed=bytes_accessed)

    resident = lambda i: (0, 0)      # weights stay VMEM-resident across steps
    batch_tile = lambda i: (0, i)    # walk the batch along the lane axis

    kernel = functools.partial(_constrained_xor_kernel, hidden=H)

    uT = pl.pallas_call(
        kernel,
        out_shape=jax.ShapeDtypeStruct((O, Bp), x.dtype),
        grid=(num_blocks,),
        in_specs=[
            pl.BlockSpec((K1, TB), batch_tile),   # packed [x.T ; mu.T] tile
            pl.BlockSpec((H, K1), resident),      # [W1 | 0]
            pl.BlockSpec((H, 1), resident),       # b1
            pl.BlockSpec((O, K2), resident),      # [W2.T | 0 | A.T]
            pl.BlockSpec((O, 1), resident),       # b2
        ],
        out_specs=pl.BlockSpec((O, TB), batch_tile),
        scratch_shapes=[pltpu.VMEM((K2, TB), jnp.float32)],
        compiler_params=pltpu.CompilerParams(
            dimension_semantics=("parallel",),    # batch tiles are independent
        ),
        cost_estimate=cost,
    )(xmuT, w1p, b1c, w2a, b2c)

    return uT[:, :B].T               # back to [B, O]


def constrained_xor_ref(x, mu, w1, b1, w2, b2, A):
    hp = jax.lax.Precision.HIGHEST
    z = jax.nn.sigmoid(jnp.dot(x, w1.T, precision=hp) + b1[None, :])
    return (jnp.dot(z, w2, precision=hp) + b2[None, :]
            + jnp.dot(mu, A, precision=hp))


if __name__ == "__main__":
    # Shapes consistent with the module: XOR-ish input_size=4, hidden=32,
    # constraint_size=4, output_size=2; batch large enough to exercise tiling.
    batch, input_size, hidden_size = 256, 4, 32
    constraint_size, output_size = 4, 2

    key = jax.random.PRNGKey(0)
    kx, kmu, kw1, kw2, kb2, ka = jax.random.split(key, 6)

    x = jax.random.normal(kx, (batch, input_size), dtype=jnp.float32)
    mu = jax.random.normal(kmu, (batch, constraint_size), dtype=jnp.float32)

    # Parameter init mirroring the PyTorch module:
    #   fc1 weight ~ Normal(0, 1), fc1 bias = zeros; Lagrange W, bias, A ~ randn.
    w1 = jax.random.normal(kw1, (hidden_size, input_size), dtype=jnp.float32)
    b1 = jnp.zeros((hidden_size,), dtype=jnp.float32)
    w2 = jax.random.normal(kw2, (hidden_size, output_size), dtype=jnp.float32)
    b2 = jax.random.normal(kb2, (output_size,), dtype=jnp.float32)
    A = jax.random.normal(ka, (constraint_size, output_size), dtype=jnp.float32)

    # 1) Single-block path (TB == B == 256).
    out = jax.block_until_ready(constrained_xor_forward(x, mu, w1, b1, w2, b2, A))
    ref = constrained_xor_ref(x, mu, w1, b1, w2, b2, A)
    assert out.shape == (batch, output_size)
    assert jnp.allclose(out, ref, atol=1e-4, rtol=1e-4), "mismatch vs reference"

    # 2) Multi-block + ragged-padding path (B=1000, forced TB=256 -> 4 blocks).
    B2 = 1000
    kx2, kmu2 = jax.random.split(jax.random.PRNGKey(1), 2)
    x2 = jax.random.normal(kx2, (B2, input_size), dtype=jnp.float32)
    mu2 = jax.random.normal(kmu2, (B2, constraint_size), dtype=jnp.float32)
    out2 = jax.block_until_ready(
        constrained_xor_forward(x2, mu2, w1, b1, w2, b2, A, block_b=256))
    ref2 = constrained_xor_ref(x2, mu2, w1, b1, w2, b2, A)
    assert out2.shape == (B2, output_size)
    assert jnp.allclose(out2, ref2, atol=1e-4, rtol=1e-4), "mismatch (ragged batch)"

    print("KERNEL_OK")
</pallas_src>

<mosaic_0001>
module attributes {stable_mosaic.version = 11 : i64} {
  func.func @_constrained_xor_kernel(%arg0: i32, %arg1: memref<8x256xf32, #tpu.memory_space<vmem>>, %arg2: memref<32x8xf32, #tpu.memory_space<vmem>>, %arg3: memref<32x1xf32, #tpu.memory_space<vmem>>, %arg4: memref<2x40xf32, #tpu.memory_space<vmem>>, %arg5: memref<2x1xf32, #tpu.memory_space<vmem>>, %arg6: memref<2x256xf32, #tpu.memory_space<vmem>>, %arg7: memref<40x256xf32, #tpu.memory_space<vmem>>) attributes {dimension_semantics = [#tpu.dimension_semantics<parallel>], iteration_bounds = array<i64: 1>, scalar_prefetch = 0 : i64, scratch_operands = 1 : i64, tpu.core_type = #tpu.core_type<tc>, window_params = [{transform_indices = @transform_0, window_bounds = array<i64: 8, 256>}, {pipeline_mode = #tpu.pipeline_mode<synchronous>, transform_indices = @transform_1, window_bounds = array<i64: 32, 8>}, {pipeline_mode = #tpu.pipeline_mode<synchronous>, transform_indices = @transform_2, window_bounds = array<i64: 32, 1>}, {pipeline_mode = #tpu.pipeline_mode<synchronous>, transform_indices = @transform_3, window_bounds = array<i64: 2, 40>}, {pipeline_mode = #tpu.pipeline_mode<synchronous>, transform_indices = @transform_4, window_bounds = array<i64: 2, 1>}, {transform_indices = @transform_5, window_bounds = array<i64: 2, 256>}]} {
    %c0 = arith.constant 0 : index
    %c0_0 = arith.constant 0 : index
    %0 = vector.load %arg2[%c0, %c0_0] : memref<32x8xf32, #tpu.memory_space<vmem>>, vector<32x8xf32>
    %c0_1 = arith.constant 0 : index
    %c0_2 = arith.constant 0 : index
    %1 = vector.load %arg1[%c0_1, %c0_2] : memref<8x256xf32, #tpu.memory_space<vmem>>, vector<8x256xf32>
    %cst = arith.constant dense<0.000000e+00> : vector<32x256xf32>
    %2 = tpu.matmul %0, %1, %cst {dimension_numbers = #tpu.dot_dimension_numbers<[1], [0], [0], [1], [0, 0, 1, 1], [], []>} : vector<32x8xf32>, vector<8x256xf32>, vector<32x256xf32> -> vector<32x256xf32>
    %c0_3 = arith.constant 0 : index
    %c0_4 = arith.constant 0 : index
    %3 = vector.load %arg3[%c0_3, %c0_4] : memref<32x1xf32, #tpu.memory_space<vmem>>, vector<32x1xf32>
    %4 = vector.broadcast %3 : vector<32x1xf32> to vector<32x256xf32>
    %5 = arith.addf %2, %4 : vector<32x256xf32>
    %6 = arith.negf %5 : vector<32x256xf32>
    %7 = math.exp %6 : vector<32x256xf32>
    %cst_5 = arith.constant 1.000000e+00 : f32
    %8 = vector.broadcast %cst_5 : f32 to vector<32x256xf32>
    %9 = arith.addf %8, %7 : vector<32x256xf32>
    %10 = arith.divf %8, %9 : vector<32x256xf32>
    %c0_6 = arith.constant 0 : index
    %c0_7 = arith.constant 0 : index
    %11 = vector.load %arg7[%c0_6, %c0_7] : memref<40x256xf32, #tpu.memory_space<vmem>>, vector<32x256xf32>
    tpu.vector_store %arg7[%c0_6, %c0_7], %10 {strides = array<i32>} : memref<40x256xf32, #tpu.memory_space<vmem>>, vector<32x256xf32>,
    %c0_8 = arith.constant 0 : index
    %c0_9 = arith.constant 0 : index
    %12 = vector.load %arg1[%c0_8, %c0_9] : memref<8x256xf32, #tpu.memory_space<vmem>>, vector<8x256xf32>
    %c32 = arith.constant 32 : index
    %c0_10 = arith.constant 0 : index
    %13 = vector.load %arg7[%c32, %c0_10] : memref<40x256xf32, #tpu.memory_space<vmem>>, vector<8x256xf32>
    tpu.vector_store %arg7[%c32, %c0_10], %12 {strides = array<i32>} : memref<40x256xf32, #tpu.memory_space<vmem>>, vector<8x256xf32>,
    %c0_11 = arith.constant 0 : index
    %c0_12 = arith.constant 0 : index
    %14 = vector.load %arg4[%c0_11, %c0_12] : memref<2x40xf32, #tpu.memory_space<vmem>>, vector<2x40xf32>
    %c0_13 = arith.constant 0 : index
    %c0_14 = arith.constant 0 : index
    %15 = vector.load %arg7[%c0_13, %c0_14] : memref<40x256xf32, #tpu.memory_space<vmem>>, vector<40x256xf32>
    %cst_15 = arith.constant dense<0.000000e+00> : vector<2x256xf32>
    %16 = tpu.matmul %14, %15, %cst_15 {dimension_numbers = #tpu.dot_dimension_numbers<[1], [0], [0], [1], [0, 0, 1, 1], [], []>} : vector<2x40xf32>, vector<40x256xf32>, vector<2x256xf32> -> vector<2x256xf32>
    %c0_16 = arith.constant 0 : index
    %c0_17 = arith.constant 0 : index
    %17 = vector.load %arg5[%c0_16, %c0_17] : memref<2x1xf32, #tpu.memory_space<vmem>>, vector<2x1xf32>
    %18 = vector.broadcast %17 : vector<2x1xf32> to vector<2x256xf32>
    %19 = arith.addf %16, %18 : vector<2x256xf32>
    %c0_18 = arith.constant 0 : index
    %c0_19 = arith.constant 0 : index
    %20 = vector.load %arg6[%c0_18, %c0_19] : memref<2x256xf32, #tpu.memory_space<vmem>>, vector<2x256xf32>
    tpu.vector_store %arg6[%c0_18, %c0_19], %19 {strides = array<i32>} : memref<2x256xf32, #tpu.memory_space<vmem>>, vector<2x256xf32>,
    return
  }
  func.func @transform_0(%arg0: i32) -> (i32, i32) {
    %c0_i32 = arith.constant 0 : i32
    %c0_i32_0 = arith.constant 0 : i32
    return %c0_i32, %arg0 : i32, i32
  }
  func.func @transform_1(%arg0: i32) -> (i32, i32) {
    %c0_i32 = arith.constant 0 : i32
    %c0_i32_0 = arith.constant 0 : i32
    %c0_i32_1 = arith.constant 0 : i32
    return %c0_i32, %c0_i32_0 : i32, i32
  }
  func.func @transform_2(%arg0: i32) -> (i32, i32) {
    %c0_i32 = arith.constant 0 : i32
    %c0_i32_0 = arith.constant 0 : i32
    %c0_i32_1 = arith.constant 0 : i32
    return %c0_i32, %c0_i32_0 : i32, i32
  }
  func.func @transform_3(%arg0: i32) -> (i32, i32) {
    %c0_i32 = arith.constant 0 : i32
    %c0_i32_0 = arith.constant 0 : i32
    %c0_i32_1 = arith.constant 0 : i32
    return %c0_i32, %c0_i32_0 : i32, i32
  }
  func.func @transform_4(%arg0: i32) -> (i32, i32) {
    %c0_i32 = arith.constant 0 : i32
    %c0_i32_0 = arith.constant 0 : i32
    %c0_i32_1 = arith.constant 0 : i32
    return %c0_i32, %c0_i32_0 : i32, i32
  }
  func.func @transform_5(%arg0: i32) -> (i32, i32) {
    %c0_i32 = arith.constant 0 : i32
    %c0_i32_0 = arith.constant 0 : i32
    return %c0_i32, %arg0 : i32, i32
  }
}

</mosaic_0001>

<bundles_post_ra>
// kernel: constrained_xor_forward.1
= control target key start
LH: loop header
LB: loop body
LE: loop exit
PB: predicated region body
PF: predicated region fallthrough
CT: control target
= control target key end

     0   :  { %vm51_vm0 = vcmask 64512   ;;  %v414_v3 = vmov 0.0   ;;  %v415_v4 = vmov 0   ;;  %s507_s0 = inlined_call_operand.vmem [shape: f32[8,256], index: 0, kind: input, shape index: {}]   ;;  %s508_s1 = inlined_call_operand.vmem [shape: f32[32,8], index: 1, kind: input, shape index: {}]   ;;  %s509_s2 = inlined_call_operand.vmem [shape: f32[32,1], index: 2, kind: input, shape index: {}]   ;;  %s510_s3 = inlined_call_operand.vmem [shape: f32[2,40], index: 3, kind: input, shape index: {}]   ;;  %s511_s4 = inlined_call_operand.vmem [shape: f32[2,1], index: 4, kind: input, shape index: {}]   ;;  %s512_s5 = inlined_call_operand.hbm [shape: f32[2,256], index: 5, kind: output, shape index: {}]  }
   0x1   :  { %v450_v0 = vld [vmem:[%s507_s0 + $0x8] sm:$0xff]  ;;  %v455_v1 = vld [vmem:[%s507_s0] sm:$0xff]  ;;  %128 = vmatprep.mubr.f32.mxu0 %v414_v3  ;;  %356 = vset.pattern.permute.xlu0 %v415_v4  ;;  %v29_v6 = vld [vmem:[%s509_s2 + $0x10] sm:$0xff] }
   0x2   :  { %v21_v2 = vld [vmem:[%s508_s1] sm:$0xff]  ;;  %64 = vmatprep.subr.mxu0 %v450_v0 }
   0x3   :  { %65 = vmatpush1.msra.mxu0 %v455_v1  ;;  %v27_v5 = vld [vmem:[%s509_s2] sm:$0xff] }
   0x4   :  { %331 = vmatmul.mubr.msk.f32.vlgmr.msra.gmra.mrb[0].mxu0 %vm51_vm0, %v21_v2  ;;  %33 = vperm.xlu0 %356, %v27_v5  }
   0x5   :  { %10 = vsyncpa [#allocation4], 0  ;;  %134 = vmatprep.mubr.f32.mxu0 %v414_v3  ;;  %v22_v7 = vld [vmem:[%s508_s1 + $0x8] sm:$0xff]  ;;  %357 = vset.pattern.permute.xlu1 %v415_v4  ;;  %v30_v9 = vld [vmem:[%s509_s2 + $0x18] sm:$0xff]  ;;  %vm230_vm1 = vcmask 326656  }
   0x6   :  { %v28_v8 = vld [vmem:[%s509_s2 + $0x8] sm:$0xff]  ;;  %43 = vperm.xlu1 %357, %v29_v6   ;;  %298 = vmatprep.mubr.f32.mxu1 %v414_v3  ;;  %v23_v10 = vld [vmem:[%s508_s1 + $0x10] sm:$0xff]  ;;  %v224_v11 = vld [vmem:[%s511_s4] sm:$0x3]  ;;  %s416_s4 = smov [#allocation3]  }
   0x7   :  { %v24_v12 = vld [vmem:[%s508_s1 + $0x18] sm:$0xff]  ;;  %s323_s14 = sshll.u32 %s416_s4, 4  ;;  %s324_s14 = int_to_ptr.vmem [resolvable:$true] %s323_s14 }
   0x8   :  { %332 = vmatmul.mubr.msk.f32.gmra.mrb[2].mxu0 %vm51_vm0, %v22_v7  ;;  %38 = vperm.xlu0 %356, %v28_v8   ;;  %v213_v7 = vld [vmem:[%s510_s3] sm:$0x3]  ;;  %s390_s15 = scalar_lea.vmem %s324_s14, 64  ;;  %p395_p1 = scmp.lt.s32.totalorder %s324_s14, %s324_s14 }
   0x9   :  { %140 = vmatprep.mubr.f32.mxu0 %v414_v3  ;;  %p391_p0 = scmp.ne.s32.totalorder %s324_s14, %s390_s15  ;;  %p396_p2 = scmp.lt.s32.totalorder %s390_s15, %s390_s15 }
   0xa   :  { %48 = vperm.xlu1 %357, %v30_v9  }
   0xb   :  { %p397_p3 = por %p396_p2, %p395_p1 }
   0xc   :  { %333 = vmatmul.mubr.msk.f32.gmra.mrb[4].mxu0 %vm51_vm0, %v23_v10  ;;  %227 = vperm.xlu0 %356, %v224_v11  }
   0xd   :  { %146 = vmatprep.mubr.f32.mxu0 %v414_v3  ;;  %p398_p4 = pnand %p397_p3, %p391_p0 }
  0x10   :  { %334 = vmatmul.mubr.msk.f32.gmra.mrb[6].mxu0 %vm51_vm0, %v24_v12 }
  0x83   :  { %v34_v13 = vpop.permute.xlu0 %33 }
  0x85   :  { %v44_v24 = vpop.permute.xlu1 %43 }
  0x87   :  { %v39_v19 = vpop.permute.xlu0 %38 }
  0x89   :  { %v49_v33 = vpop.permute.xlu1 %48 }
  0x8b   :  { %v228_v8 = vpop.permute.xlu0 %227 }
  0xd7   :  { %v130_v14 = vpop.f32.mrb[0].mxu0 }
  0xd8   :  { %v131_v15 = vadd.f32 %v130_v14, %v34_v13  ;;  %v132_v16 = vpop.f32.mrb[1].mxu0 }
  0xd9   :  { %v133_v17 = vadd.f32 %v132_v16, %v34_v13 }
  0xda   :  { %v335_v18 = vmul.f32 -1.442695, %v131_v15 }
  0xdb   :  { %v336_v20 = vmul.f32 -1.442695, %v133_v17  ;;  %v136_v21 = vpop.f32.mrb[2].mxu0 }
  0xdc   :  { %358 = vpow2.f32 %v335_v18  ;;  %v137_v22 = vadd.f32 %v136_v21, %v39_v19  ;;  %v138_v23 = vpop.f32.mrb[3].mxu0 }
  0xdd   :  { %360 = vpow2.f32 %v336_v20  ;;  %v139_v25 = vadd.f32 %v138_v23, %v39_v19 }
  0xde   :  { %v337_v26 = vmul.f32 -1.442695, %v137_v22 }
  0xdf   :  { %v338_v27 = vmul.f32 -1.442695, %v139_v25  ;;  %v142_v28 = vpop.f32.mrb[4].mxu0 }
  0xe0   :  { %362 = vpow2.f32 %v337_v26  ;;  %v143_v29 = vadd.f32 %v142_v28, %v44_v24  ;;  %v144_v30 = vpop.f32.mrb[5].mxu0 }
  0xe1   :  { %364 = vpow2.f32 %v338_v27  ;;  %v145_v31 = vadd.f32 %v144_v30, %v44_v24 }
  0xe2   :  { %v339_v32 = vmul.f32 -1.442695, %v143_v29 }
  0xe3   :  { %v340_v34 = vmul.f32 -1.442695, %v145_v31  ;;  %v148_v35 = vpop.f32.mrb[6].mxu0 }
  0xe4   :  { %366 = vpow2.f32 %v339_v32  ;;  %v149_v36 = vadd.f32 %v148_v35, %v49_v33  ;;  %v150_v37 = vpop.f32.mrb[7].mxu0 }
  0xe5   :  { %v151_v38 = vadd.f32 %v150_v37, %v49_v33  ;;  %368 = vpow2.f32 %v340_v34 }
  0xe6   :  { %v359_v39 = vpop.eup %358  ;;  %v341_v40 = vmul.f32 -1.442695, %v149_v36 }
  0xe7   :  { %v361_v41 = vpop.eup %360  ;;  %v177_v42 = vadd.f32 1.0, %v359_v39  ;;  %v342_v43 = vmul.f32 -1.442695, %v151_v38 }
  0xe8   :  { %v178_v44 = vadd.f32 1.0, %v361_v41  ;;  %370 = vpow2.f32 %v341_v40 }
  0xe9   :  { %372 = vrcp.f32 %v177_v42 }
  0xea   :  { %v363_v45 = vpop.eup %362  ;;  %374 = vpow2.f32 %v342_v43 }
  0xeb   :  { %v365_v46 = vpop.eup %364  ;;  %v179_v47 = vadd.f32 1.0, %v363_v45  ;;  %376 = vrcp.f32 %v178_v44 }
  0xec   :  { %v180_v48 = vadd.f32 1.0, %v365_v46 }
  0xed   :  { %378 = vrcp.f32 %v179_v47 }
  0xee   :  { %v367_v49 = vpop.eup %366  ;;  %380 = vrcp.f32 %v180_v48 }
  0xef   :  { %v369_v50 = vpop.eup %368  ;;  %v181_v51 = vadd.f32 1.0, %v367_v49 }
  0xf0   :  { %v182_v53 = vadd.f32 1.0, %v369_v50 }
  0xf1   :  { %382 = vrcp.f32 %v181_v51 }
  0xf2   :  { %v371_v52 = vpop.eup %370 }
  0xf3   :  { %v183_v54 = vadd.f32 1.0, %v371_v52  ;;  %v373_v55 = vpop.eup %372 }
  0xf4   :  { %v375_v56 = vpop.eup %374 }
  0xf5   :  { %384 = vrcp.f32 %v183_v54  ;;  %v377_v57 = vpop.eup %376  ;;  %v184_v58 = vadd.f32 1.0, %v375_v56 }
  0xf6   :  { %386 = vrcp.f32 %v182_v53 }
  0xf7   :  { %v379_v59 = vpop.eup %378  ;;  %388 = vrcp.f32 %v184_v58 }
  0xf8   :  { %v381_v60 = vpop.eup %380  ;;  %v347_v61 = vpack.c.bf16 %v379_v59, %v373_v55 }
  0xf9   :  { %v345_v62 = vpack.c.bf16 %v381_v60, %v377_v57 }
  0xfb   :  { %346 = vmatprep.subr.bf16.mxu1 %v345_v62  ;;  %v383_v63 = vpop.eup %382 }
  0xfc   :  { %348 = vmatpush1.bf16.msra.mxu1 %v347_v61 }
  0xff   :  { %v385_v2 = vpop.eup %384 }
 0x100   :  { %v351_v3 = vpack.c.bf16 %v385_v2, %v383_v63  ;;  %v387_v4 = vpop.eup %386 }
 0x101   :  { %v389_v5 = vpop.eup %388 }
 0x102   :  { %v349_v6 = vpack.c.bf16 %v389_v5, %v387_v4 }
 0x104   :  { %350 = vmatprep.subr.bf16.mxu1 %v349_v6 }
 0x105   :  { %352 = vmatpush1.bf16.msra.mxu1 %v351_v3 }
 0x106   :  { %242 = vmatprep.subr.mxu1 %v450_v0 }
 0x109   :  { %243 = vmatpush1.msra.mxu1 %v455_v1 }
 0x10a   :  { %343 = vmatmul.mubr.msk.f32.vlgmr.msra.gmra.mrb[0].mxu1 %vm230_vm1, %v213_v7 }
 0x1dd   :  { %v300_v9 = vpop.f32.mrb[0].mxu1 }
 0x1de   :  { %v301_v10 = vadd.f32 %v300_v9, %v228_v8  ;;  %v302_v11 = vpop.f32.mrb[1].mxu1 }
 0x1df   :  { %v303_v12 = vadd.f32 %v302_v11, %v228_v8 }
 0x1e1   :  { %v307_v13 = vcombine.low %v301_v10, %v303_v12 }
 0x1e3   :  { %344 = vst.sshfl [vmem:[#allocation3] sm:$0x33 pattern:$0x76325410] %v307_v13 }
 0x1e4   :  { %401 = shalt.err (!%p398_p4)
}
 0x1e5   :  { %s402_s17 = scalar_lea.hbm %s512_s5, 64 }
 0x1e6   :  { %p403_p5 = scmp.ne.s32.totalorder %s512_s5, %s402_s17  ;;  %p406_p6 = scmp.lt.u32.totalorder %s402_s17, %s512_s5 }
 0x1e8   :  { %p408_p7 = pnand %p406_p6, %p403_p5 }
 0x1ea   :  { %411 = shalt.err (!%p408_p7)
}
 0x1eb   :  { %326 = dma.vmem_to_hbm [thread:$0]  %s324_s14, 64, %s512_s5, [#allocation4]  }
 0x1ec   :  { %412 = dma.done.wait [#allocation4], 64  }
 0x1ed   :  { %413 = vsyncadd [#allocation4], 4294967232 }
 0x1ee   :  { %330 = vsyncpa [#allocation4], 1 }

</bundles_post_ra>
